<compile_context>
chip_gen: v6e
topology: v6e:2x2x1
jax: 0.10.0
libtpu: 0.0.40
codegen_flags: <defaults>
</compile_context>

<pallas_src>
import functools

import jax
import jax.numpy as jnp
from jax.experimental import pallas as pl
from jax.experimental.pallas import tpu as pltpu


# ----------------------------------------------------------------------------
# Fused kernel: conv(3x3,same) as one im2col matmul -> ReLU -> GAP ->
#               Linear+ReLU x2 -> Linear.
# One grid step processes TB images; the only HBM write is z (TB, 256).
# ----------------------------------------------------------------------------
def _fused_forward_kernel(p_ref, wc_ref, bc_ref,
                          w1_ref, b1_ref, w2_ref, b2_ref, w3_ref, b3_ref,
                          z_ref, *, TB, HW):
    # Conv: single MXU matmul, bf16 operands, f32 accumulation.
    #   p_ref : (TB*HW, Kp=128) bf16 im2col patches (zero-padded K)
    #   wc_ref: (Kp, Cf)        bf16 conv weight    (zero-padded K rows)
    acc = jnp.dot(p_ref[...], wc_ref[...],
                  preferred_element_type=jnp.float32)          # (TB*HW, Cf) f32

    # Bias + ReLU (f32 epilogue; Cf=32 is lane-sparse but tiny at these shapes).
    y = jnp.maximum(acc + bc_ref[...], 0.0)

    # Global average pool: per-image mean over HW (O(HW) memory, XLU reduce).
    feats = jnp.mean(y.reshape(TB, HW, -1), axis=1)            # (TB, Cf) f32

    # ProjectionHead: Linear+ReLU, Linear+ReLU, Linear  (all f32, tiny)
    h = jnp.dot(feats, w1_ref[...], preferred_element_type=jnp.float32) + b1_ref[...]
    h = jnp.maximum(h, 0.0)
    h = jnp.dot(h, w2_ref[...], preferred_element_type=jnp.float32) + b2_ref[...]
    h = jnp.maximum(h, 0.0)
    z = jnp.dot(h, w3_ref[...], preferred_element_type=jnp.float32) + b3_ref[...]

    z_ref[...] = z                      # lane-dense store: last dim = 256


# ----------------------------------------------------------------------------
# Wrapper: im2col prep (NCHW -> lane-dense (B*HW, 128) bf16) + pallas_call.
# ----------------------------------------------------------------------------
def contrastive_model_forward(x_nchw, params, *, batch_block=None):
    B, C, H, W = x_nchw.shape
    HW = H * W
    Cf = params["wc"].shape[-1]
    hidden = params["w1"].shape[1]
    out_dim = params["w3"].shape[1]

    K = 9 * C
    Kp = max(128, pl.cdiv(K, 128) * 128)      # pad contraction depth to lanes

    # --- im2col in the wrapper (one XLA fusion, tiny at these shapes) -------
    # NCHW -> NHWC, zero-pad spatially, gather the 9 taps (tap-major,
    # channel-minor to match the weight layout), flatten rows image-major.
    x_nhwc = jnp.transpose(x_nchw, (0, 2, 3, 1))
    xpad = jnp.pad(x_nhwc, ((0, 0), (1, 1), (1, 1), (0, 0)))
    taps = [xpad[:, dh:dh + H, dw:dw + W, :] for dh in range(3) for dw in range(3)]
    patches = jnp.stack(taps, axis=3).reshape(B * HW, K).astype(jnp.bfloat16)
    patches = jnp.pad(patches, ((0, 0), (0, Kp - K)))           # (B*HW, Kp) bf16

    # Conv weight (9, C, Cf) -> (K, Cf) -> zero-pad rows to (Kp, Cf), bf16.
    wcp = params["wc"].reshape(K, Cf).astype(jnp.bfloat16)
    wcp = jnp.pad(wcp, ((0, Kp - K), (0, 0)))

    # --- batch-block sizing: split only when per-step work amortizes the
    #     ~0.35us/step grid overhead AND the output block stays 8-aligned. ---
    if batch_block is None:
        TB = B
        while TB % 2 == 0 and (TB // 2) % 8 == 0 and (TB // 2) * HW >= 1024:
            TB //= 2
    else:
        TB = batch_block
    assert B % TB == 0 and (TB == B or TB % 8 == 0)
    G = B // TB

    const2 = lambda b: (0, 0)
    kernel = functools.partial(_fused_forward_kernel, TB=TB, HW=HW)

    z = pl.pallas_call(
        kernel,
        out_shape=jax.ShapeDtypeStruct((B, out_dim), jnp.float32),
        grid=(G,),
        in_specs=[
            pl.BlockSpec((TB * HW, Kp), lambda b: (b, 0)),   # im2col patches
            pl.BlockSpec((Kp, Cf), const2),                  # conv weight (resident)
            pl.BlockSpec((1, Cf), const2),                   # conv bias
            pl.BlockSpec((Cf, hidden), const2),              # w1
            pl.BlockSpec((1, hidden), const2),               # b1
            pl.BlockSpec((hidden, hidden), const2),          # w2
            pl.BlockSpec((1, hidden), const2),               # b2
            pl.BlockSpec((hidden, out_dim), const2),         # w3
            pl.BlockSpec((1, out_dim), const2),              # b3
        ],
        out_specs=pl.BlockSpec((TB, out_dim), lambda b: (b, 0)),
        compiler_params=pltpu.CompilerParams(
            dimension_semantics=("parallel",)),
    )(patches, wcp, params["bc"],
      params["w1"], params["b1"], params["w2"], params["b2"],
      params["w3"], params["b3"])
    return z


# ----------------------------------------------------------------------------
# Deterministic parameter init (PyTorch-like uniform(-1/sqrt(fan_in), ...))
# ----------------------------------------------------------------------------
def init_params(key, c_in=4, backbone_dim=32, out_dim=256):
    hidden = backbone_dim // 2
    ks = jax.random.split(key, 8)

    def lin(kw, kb, fan_in, fan_out, w_shape=None):
        bound = 1.0 / jnp.sqrt(fan_in)
        shape = (fan_in, fan_out) if w_shape is None else w_shape
        w = jax.random.uniform(kw, shape, jnp.float32, -bound, bound)
        b = jax.random.uniform(kb, (1, fan_out), jnp.float32, -bound, bound)
        return w, b

    # Conv weight laid out per-tap (9, C_in, Cf); stored bf16 for DMA + MXU.
    wc, bc = lin(ks[0], ks[1], 9 * c_in, backbone_dim,
                 w_shape=(9, c_in, backbone_dim))
    w1, b1 = lin(ks[2], ks[3], backbone_dim, hidden)
    w2, b2 = lin(ks[4], ks[5], hidden, hidden)
    w3, b3 = lin(ks[6], ks[7], hidden, out_dim)
    return dict(wc=wc.astype(jnp.bfloat16), bc=bc,
                w1=w1, b1=b1, w2=w2, b2=b2, w3=w3, b3=b3)


# ----------------------------------------------------------------------------
# Pure-JAX reference (same bf16 casts on conv operands, f32 accumulation)
# ----------------------------------------------------------------------------
def reference_forward(x_nchw, p):
    B, C, H, W = x_nchw.shape
    x = jnp.transpose(x_nchw, (0, 2, 3, 1))
    xp = jnp.pad(x, ((0, 0), (1, 1), (1, 1), (0, 0)))
    cols = [xp[:, dh:dh + H, dw:dw + W, :] for dh in range(3) for dw in range(3)]
    patches = jnp.stack(cols, axis=3).reshape(B, H * W, 9 * C).astype(jnp.bfloat16)
    wc = p["wc"].reshape(9 * C, -1).astype(jnp.bfloat16)
    y = jnp.einsum("bpk,kc->bpc", patches, wc,
                   preferred_element_type=jnp.float32)
    y = jnp.maximum(y + p["bc"], 0.0)
    f = jnp.mean(y, axis=1)
    h = jnp.maximum(f @ p["w1"] + p["b1"], 0.0)
    h = jnp.maximum(h @ p["w2"] + p["b2"], 0.0)
    return h @ p["w3"] + p["b3"]


if __name__ == "__main__":
    key = jax.random.PRNGKey(0)
    k_params, k_x = jax.random.split(key)

    B, C, H, W = 2, 4, 16, 16          # small NCHW input, like PyTorch conv input
    x = jax.random.normal(k_x, (B, C, H, W), dtype=jnp.float32)
    params = init_params(k_params, c_in=C, backbone_dim=32, out_dim=256)

    z = contrastive_model_forward(x, params)
    z = jax.block_until_ready(z)

    z_ref = reference_forward(x, params)
    assert z.shape == (B, 256), z.shape
    assert jnp.allclose(z, z_ref, rtol=2e-3, atol=2e-3), "mismatch vs reference"

    print("KERNEL_OK")
</pallas_src>

<mosaic_0001>
module attributes {stable_mosaic.version = 11 : i64} {
  func.func @_fused_forward_kernel(%arg0: i32, %arg1: memref<512x128xbf16, #tpu.memory_space<vmem>>, %arg2: memref<128x32xbf16, #tpu.memory_space<vmem>>, %arg3: memref<1x32xf32, #tpu.memory_space<vmem>>, %arg4: memref<32x16xf32, #tpu.memory_space<vmem>>, %arg5: memref<1x16xf32, #tpu.memory_space<vmem>>, %arg6: memref<16x16xf32, #tpu.memory_space<vmem>>, %arg7: memref<1x16xf32, #tpu.memory_space<vmem>>, %arg8: memref<16x256xf32, #tpu.memory_space<vmem>>, %arg9: memref<1x256xf32, #tpu.memory_space<vmem>>, %arg10: memref<2x256xf32, #tpu.memory_space<vmem>>) attributes {dimension_semantics = [#tpu.dimension_semantics<parallel>], iteration_bounds = array<i64: 1>, scalar_prefetch = 0 : i64, scratch_operands = 0 : i64, tpu.core_type = #tpu.core_type<tc>, window_params = [{transform_indices = @transform_0, window_bounds = array<i64: 512, 128>}, {pipeline_mode = #tpu.pipeline_mode<synchronous>, transform_indices = @transform_1, window_bounds = array<i64: 128, 32>}, {pipeline_mode = #tpu.pipeline_mode<synchronous>, transform_indices = @transform_2, window_bounds = array<i64: 1, 32>}, {pipeline_mode = #tpu.pipeline_mode<synchronous>, transform_indices = @transform_3, window_bounds = array<i64: 32, 16>}, {pipeline_mode = #tpu.pipeline_mode<synchronous>, transform_indices = @transform_4, window_bounds = array<i64: 1, 16>}, {pipeline_mode = #tpu.pipeline_mode<synchronous>, transform_indices = @transform_5, window_bounds = array<i64: 16, 16>}, {pipeline_mode = #tpu.pipeline_mode<synchronous>, transform_indices = @transform_6, window_bounds = array<i64: 1, 16>}, {pipeline_mode = #tpu.pipeline_mode<synchronous>, transform_indices = @transform_7, window_bounds = array<i64: 16, 256>}, {pipeline_mode = #tpu.pipeline_mode<synchronous>, transform_indices = @transform_8, window_bounds = array<i64: 1, 256>}, {transform_indices = @transform_9, window_bounds = array<i64: 2, 256>}]} {
    %c0 = arith.constant 0 : index
    %c0_0 = arith.constant 0 : index
    %0 = vector.load %arg1[%c0, %c0_0] : memref<512x128xbf16, #tpu.memory_space<vmem>>, vector<512x128xbf16>
    %c0_1 = arith.constant 0 : index
    %c0_2 = arith.constant 0 : index
    %1 = vector.load %arg2[%c0_1, %c0_2] : memref<128x32xbf16, #tpu.memory_space<vmem>>, vector<128x32xbf16>
    %cst = arith.constant dense<0.000000e+00> : vector<512x32xf32>
    %2 = tpu.matmul %0, %1, %cst {dimension_numbers = #tpu.dot_dimension_numbers<[1], [0], [0], [1], [0, 0, 1, 1], [], []>} : vector<512x128xbf16>, vector<128x32xbf16>, vector<512x32xf32> -> vector<512x32xf32>
    %c0_3 = arith.constant 0 : index
    %c0_4 = arith.constant 0 : index
    %3 = vector.load %arg3[%c0_3, %c0_4] : memref<1x32xf32, #tpu.memory_space<vmem>>, vector<1x32xf32>
    %4 = vector.broadcast %3 : vector<1x32xf32> to vector<512x32xf32>
    %5 = arith.addf %2, %4 : vector<512x32xf32>
    %cst_5 = arith.constant 0.000000e+00 : f32
    %6 = vector.broadcast %cst_5 : f32 to vector<512x32xf32>
    %7 = arith.maximumf %5, %6 : vector<512x32xf32>
    %8 = vector.shape_cast %7 : vector<512x32xf32> to vector<2x256x32xf32>
    %cst_6 = arith.constant dense<0.000000e+00> : vector<2x32xf32>
    %9 = vector.multi_reduction <add>, %8, %cst_6 [1] : vector<2x256x32xf32> to vector<2x32xf32>
    %cst_7 = arith.constant 2.560000e+02 : f32
    %10 = vector.broadcast %cst_7 : f32 to vector<2x32xf32>
    %11 = arith.divf %9, %10 : vector<2x32xf32>
    %c0_8 = arith.constant 0 : index
    %c0_9 = arith.constant 0 : index
    %12 = vector.load %arg4[%c0_8, %c0_9] : memref<32x16xf32, #tpu.memory_space<vmem>>, vector<32x16xf32>
    %cst_10 = arith.constant dense<0.000000e+00> : vector<2x16xf32>
    %13 = tpu.matmul %11, %12, %cst_10 {dimension_numbers = #tpu.dot_dimension_numbers<[1], [0], [0], [1], [0, 0, 1, 1], [], []>} : vector<2x32xf32>, vector<32x16xf32>, vector<2x16xf32> -> vector<2x16xf32>
    %c0_11 = arith.constant 0 : index
    %c0_12 = arith.constant 0 : index
    %14 = vector.load %arg5[%c0_11, %c0_12] : memref<1x16xf32, #tpu.memory_space<vmem>>, vector<1x16xf32>
    %15 = vector.broadcast %14 : vector<1x16xf32> to vector<2x16xf32>
    %16 = arith.addf %13, %15 : vector<2x16xf32>
    %cst_13 = arith.constant 0.000000e+00 : f32
    %17 = vector.broadcast %cst_13 : f32 to vector<2x16xf32>
    %18 = arith.maximumf %16, %17 : vector<2x16xf32>
    %c0_14 = arith.constant 0 : index
    %c0_15 = arith.constant 0 : index
    %19 = vector.load %arg6[%c0_14, %c0_15] : memref<16x16xf32, #tpu.memory_space<vmem>>, vector<16x16xf32>
    %cst_16 = arith.constant dense<0.000000e+00> : vector<2x16xf32>
    %20 = tpu.matmul %18, %19, %cst_16 {dimension_numbers = #tpu.dot_dimension_numbers<[1], [0], [0], [1], [0, 0, 1, 1], [], []>} : vector<2x16xf32>, vector<16x16xf32>, vector<2x16xf32> -> vector<2x16xf32>
    %c0_17 = arith.constant 0 : index
    %c0_18 = arith.constant 0 : index
    %21 = vector.load %arg7[%c0_17, %c0_18] : memref<1x16xf32, #tpu.memory_space<vmem>>, vector<1x16xf32>
    %22 = vector.broadcast %21 : vector<1x16xf32> to vector<2x16xf32>
    %23 = arith.addf %20, %22 : vector<2x16xf32>
    %cst_19 = arith.constant 0.000000e+00 : f32
    %24 = vector.broadcast %cst_19 : f32 to vector<2x16xf32>
    %25 = arith.maximumf %23, %24 : vector<2x16xf32>
    %c0_20 = arith.constant 0 : index
    %c0_21 = arith.constant 0 : index
    %26 = vector.load %arg8[%c0_20, %c0_21] : memref<16x256xf32, #tpu.memory_space<vmem>>, vector<16x256xf32>
    %cst_22 = arith.constant dense<0.000000e+00> : vector<2x256xf32>
    %27 = tpu.matmul %25, %26, %cst_22 {dimension_numbers = #tpu.dot_dimension_numbers<[1], [0], [0], [1], [0, 0, 1, 1], [], []>} : vector<2x16xf32>, vector<16x256xf32>, vector<2x256xf32> -> vector<2x256xf32>
    %c0_23 = arith.constant 0 : index
    %c0_24 = arith.constant 0 : index
    %28 = vector.load %arg9[%c0_23, %c0_24] : memref<1x256xf32, #tpu.memory_space<vmem>>, vector<1x256xf32>
    %29 = vector.broadcast %28 : vector<1x256xf32> to vector<2x256xf32>
    %30 = arith.addf %27, %29 : vector<2x256xf32>
    %c0_25 = arith.constant 0 : index
    %c0_26 = arith.constant 0 : index
    %31 = vector.load %arg10[%c0_25, %c0_26] : memref<2x256xf32, #tpu.memory_space<vmem>>, vector<2x256xf32>
    tpu.vector_store %arg10[%c0_25, %c0_26], %30 {strides = array<i32>} : memref<2x256xf32, #tpu.memory_space<vmem>>, vector<2x256xf32>,
    return
  }
  func.func @transform_0(%arg0: i32) -> (i32, i32) {
    %c0_i32 = arith.constant 0 : i32
    %c0_i32_0 = arith.constant 0 : i32
    return %arg0, %c0_i32 : i32, i32
  }
  func.func @transform_1(%arg0: i32) -> (i32, i32) {
    %c0_i32 = arith.constant 0 : i32
    %c0_i32_0 = arith.constant 0 : i32
    %c0_i32_1 = arith.constant 0 : i32
    return %c0_i32, %c0_i32_0 : i32, i32
  }
  func.func @transform_2(%arg0: i32) -> (i32, i32) {
    %c0_i32 = arith.constant 0 : i32
    %c0_i32_0 = arith.constant 0 : i32
    %c0_i32_1 = arith.constant 0 : i32
    return %c0_i32, %c0_i32_0 : i32, i32
  }
  func.func @transform_3(%arg0: i32) -> (i32, i32) {
    %c0_i32 = arith.constant 0 : i32
    %c0_i32_0 = arith.constant 0 : i32
    %c0_i32_1 = arith.constant 0 : i32
    return %c0_i32, %c0_i32_0 : i32, i32
  }
  func.func @transform_4(%arg0: i32) -> (i32, i32) {
    %c0_i32 = arith.constant 0 : i32
    %c0_i32_0 = arith.constant 0 : i32
    %c0_i32_1 = arith.constant 0 : i32
    return %c0_i32, %c0_i32_0 : i32, i32
  }
  func.func @transform_5(%arg0: i32) -> (i32, i32) {
    %c0_i32 = arith.constant 0 : i32
    %c0_i32_0 = arith.constant 0 : i32
    %c0_i32_1 = arith.constant 0 : i32
    return %c0_i32, %c0_i32_0 : i32, i32
  }
  func.func @transform_6(%arg0: i32) -> (i32, i32) {
    %c0_i32 = arith.constant 0 : i32
    %c0_i32_0 = arith.constant 0 : i32
    %c0_i32_1 = arith.constant 0 : i32
    return %c0_i32, %c0_i32_0 : i32, i32
  }
  func.func @transform_7(%arg0: i32) -> (i32, i32) {
    %c0_i32 = arith.constant 0 : i32
    %c0_i32_0 = arith.constant 0 : i32
    %c0_i32_1 = arith.constant 0 : i32
    return %c0_i32, %c0_i32_0 : i32, i32
  }
  func.func @transform_8(%arg0: i32) -> (i32, i32) {
    %c0_i32 = arith.constant 0 : i32
    %c0_i32_0 = arith.constant 0 : i32
    %c0_i32_1 = arith.constant 0 : i32
    return %c0_i32, %c0_i32_0 : i32, i32
  }
  func.func @transform_9(%arg0: i32) -> (i32, i32) {
    %c0_i32 = arith.constant 0 : i32
    %c0_i32_0 = arith.constant 0 : i32
    return %arg0, %c0_i32 : i32, i32
  }
}

</mosaic_0001>

<bundles_post_ra>
// kernel: tpu_custom_call.1
= control target key start
LH: loop header
LB: loop body
LE: loop exit
PB: predicated region body
PF: predicated region fallthrough
CT: control target
= control target key end

     0   :  { %14 = vsyncpa [#allocation3], 0  ;;  %s1782_s0 = inlined_call_operand.hbm [shape: bf16[512,128], index: 0, kind: input, shape index: {}]   ;;  %s1783_s1 = inlined_call_operand.vmem [shape: bf16[128,32], index: 1, kind: input, shape index: {}]   ;;  %s1784_s2 = inlined_call_operand.vmem [shape: f32[1,32], index: 2, kind: input, shape index: {}]   ;;  %s1785_s3 = inlined_call_operand.vmem [shape: f32[32,16], index: 3, kind: input, shape index: {}]   ;;  %s1786_s4 = inlined_call_operand.vmem [shape: f32[1,16], index: 4, kind: input, shape index: {}]   ;;  %s1787_s5 = inlined_call_operand.vmem [shape: f32[16,16], index: 5, kind: input, shape index: {}]   ;;  %s1788_s6 = inlined_call_operand.vmem [shape: f32[1,16], index: 6, kind: input, shape index: {}]   ;;  %s1789_s7 = inlined_call_operand.vmem [shape: f32[16,256], index: 7, kind: input, shape index: {}]   ;;  %s1790_s8 = inlined_call_operand.vmem [shape: f32[1,256], index: 8, kind: input, shape index: {}]   ;;  %s1791_s9 = inlined_call_operand.hbm [shape: f32[2,256], index: 9, kind: output, shape index: {}]  }
   0x1   :  { %15 = vsyncpa [#allocation4], 0  ;;  %s1458_s30 = smov [#allocation2]  }
   0x2   :  { %s21_s10 = sshll.u32 %s1458_s30, 4  ;;  %s22_s10 = int_to_ptr.vmem [resolvable:$true] %s21_s10 }
   0x3   :  { %s1422_s11 = scalar_lea.vmem %s22_s10, 4096  ;;  %p1427_p1 = scmp.lt.s32.totalorder %s22_s10, %s22_s10 }
   0x4   :  { %p1423_p0 = scmp.ne.s32.totalorder %s22_s10, %s1422_s11  ;;  %p1428_p2 = scmp.lt.s32.totalorder %s1422_s11, %s1422_s11 }
   0x6   :  { %p1429_p3 = por %p1428_p2, %p1427_p1 }
   0x8   :  { %p1430_p4 = pnand %p1429_p3, %p1423_p0 }
   0xa   :  { %1433 = shalt.err (!%p1430_p4)
}
   0xb   :  { %s1459_s12 = smov 64   ;;  %s1460_s13 = smov 4  }
   0xc   :  { %27 = dma.hbm_to_vmem [thread:$0]  %s1782_s0, 4096, %s22_s10, [#allocation3], %s1459_s12, %s1459_s12, %s1460_s13  }
   0xd   :  { %1454 = dma.done.wait [#allocation3], 4096  }
   0xe   :  { %1455 = vsyncadd [#allocation3], 4294963200  ;;  %v1374_v0 = vld [vmem:[%s1783_s1 + $0x38] sm:$0xff]   ;;  %v1375_v1 = vld [vmem:[%s1783_s1 + $0x30] sm:$0xff]   ;;  %v1461_v41 = vmov 0.0   ;;  %vm728_vm0 = vcmask 261120  }
   0xf   :  { %1254 = vmatprep.subr.bf16.mxu0 %v1374_v0  ;;  %1352 = vmatprep.subr.bf16.mxu1 %v1374_v0  ;;  %v1376_v2 = vld [vmem:[%s1783_s1 + $0x28] sm:$0xff]   ;;  %v1377_v3 = vld [vmem:[%s1783_s1 + $0x20] sm:$0xff]   ;;  %v1378_v5 = vld [vmem:[%s1783_s1 + $0x18] sm:$0xff]   ;;  %vm1462_vm1 = vmmov 0   ;;  %vm883_vm2 = vcmask 1041409   ;;  %vm967_vm3 = vcmask 130048  }
  0x10   :  { %1255 = vmatpush3.bf16.msra.mxu0 %v1374_v0  ;;  %1360 = vmatpush3.bf16.msra.mxu1 %v1374_v0  ;;  %v1382_v4 = vld [vmem:[#allocation2] sm:$0xff]   ;;  %v1379_v6 = vld [vmem:[%s1783_s1 + $0x10] sm:$0xff]   ;;  %v1380_v7 = vld [vmem:[%s1783_s1 + $0x8] sm:$0xff]  }
  0x11   :  { %1256 = vmatprep.subr.bf16.mxu0 %v1375_v1  ;;  %1353 = vmatprep.subr.bf16.mxu1 %v1375_v1  ;;  %v1381_v8 = vld [vmem:[%s1783_s1] sm:$0xff]   ;;  %v1400_v9 = vld [vmem:[#allocation2 + $0x90] sm:$0xff]   ;;  %v1383_v10 = vld [vmem:[#allocation2 + $0x8] sm:$0xff]  }
  0x12   :  { %1270 = vmatprep.mubr.bf16.mxu0 %v1382_v4  ;;  %v1384_v11 = vld [vmem:[#allocation2 + $0x10] sm:$0xff]   ;;  %1306 = vmatprep.mubr.bf16.mxu1 %v1400_v9  ;;  %v1401_v12 = vld [vmem:[#allocation2 + $0x98] sm:$0xff]   ;;  %v1402_v13 = vld [vmem:[#allocation2 + $0xa0] sm:$0xff]  }
  0x13   :  { %v1385_v14 = vld [vmem:[#allocation2 + $0x18] sm:$0xff]   ;;  %v1386_v15 = vld [vmem:[#allocation2 + $0x20] sm:$0xff]   ;;  %v1403_v16 = vld [vmem:[#allocation2 + $0xa8] sm:$0xff]  }
  0x14   :  { %1257 = vmatpush3.bf16.msra.mxu0 %v1375_v1  ;;  %1361 = vmatpush3.bf16.msra.mxu1 %v1375_v1  ;;  %v1404_v17 = vld [vmem:[#allocation2 + $0xb0] sm:$0xff]   ;;  %v1387_v18 = vld [vmem:[#allocation2 + $0x28] sm:$0xff]   ;;  %v1405_v19 = vld [vmem:[#allocation2 + $0xb8] sm:$0xff]  }
  0x15   :  { %1258 = vmatprep.subr.bf16.mxu0 %v1376_v2  ;;  %1354 = vmatprep.subr.bf16.mxu1 %v1376_v2  ;;  %v1388_v20 = vld [vmem:[#allocation2 + $0x30] sm:$0xff]   ;;  %v1406_v21 = vld [vmem:[#allocation2 + $0xc0] sm:$0xff]   ;;  %v1389_v22 = vld [vmem:[#allocation2 + $0x38] sm:$0xff]  }
  0x16   :  { %v1407_v23 = vld [vmem:[#allocation2 + $0xc8] sm:$0xff]   ;;  %v1390_v24 = vld [vmem:[#allocation2 + $0x40] sm:$0xff]   ;;  %v1408_v25 = vld [vmem:[#allocation2 + $0xd0] sm:$0xff]  }
  0x17   :  { %v1391_v26 = vld [vmem:[#allocation2 + $0x48] sm:$0xff]   ;;  %v1409_v27 = vld [vmem:[#allocation2 + $0xd8] sm:$0xff]   ;;  %v1392_v28 = vld [vmem:[#allocation2 + $0x50] sm:$0xff]  }
  0x18   :  { %1259 = vmatpush3.bf16.msra.mxu0 %v1376_v2  ;;  %1362 = vmatpush3.bf16.msra.mxu1 %v1376_v2  ;;  %v1410_v29 = vld [vmem:[#allocation2 + $0xe0] sm:$0xff]   ;;  %v1393_v30 = vld [vmem:[#allocation2 + $0x58] sm:$0xff]   ;;  %v1411_v31 = vld [vmem:[#allocation2 + $0xe8] sm:$0xff]  }
  0x19   :  { %1260 = vmatprep.subr.bf16.mxu0 %v1377_v3  ;;  %1355 = vmatprep.subr.bf16.mxu1 %v1377_v3  ;;  %v1394_v32 = vld [vmem:[#allocation2 + $0x60] sm:$0xff]   ;;  %v1412_v33 = vld [vmem:[#allocation2 + $0xf0] sm:$0xff]   ;;  %v1395_v34 = vld [vmem:[#allocation2 + $0x68] sm:$0xff]  }
  0x1a   :  { %v1413_v35 = vld [vmem:[#allocation2 + $0xf8] sm:$0xff]   ;;  %v1396_v36 = vld [vmem:[#allocation2 + $0x70] sm:$0xff]   ;;  %v1398_v38 = vld [vmem:[#allocation2 + $0x80] sm:$0xff]  }
  0x1b   :  { %v1397_v37 = vld [vmem:[#allocation2 + $0x78] sm:$0xff]   ;;  %v1399_v39 = vld [vmem:[#allocation2 + $0x88] sm:$0xff]   ;;  %v872_v42 = vld [vmem:[%s1785_s3 + $0x10] sm:$0xff] }
  0x1c   :  { %1261 = vmatpush3.bf16.msra.mxu0 %v1377_v3  ;;  %1363 = vmatpush3.bf16.msra.mxu1 %v1377_v3  ;;  %v873_v40 = vld [vmem:[%s1785_s3 + $0x18] sm:$0xff]  ;;  %v1553_v44 = vld [vmem:[%s1784_s2] ss:$0 sm:$0xff] }
  0x1d   :  { %1262 = vmatprep.subr.bf16.mxu0 %v1378_v5  ;;  %1356 = vmatprep.subr.bf16.mxu1 %v1378_v5 }
  0x20   :  { %1263 = vmatpush3.bf16.msra.mxu0 %v1378_v5  ;;  %1364 = vmatpush3.bf16.msra.mxu1 %v1378_v5 }
  0x21   :  { %1264 = vmatprep.subr.bf16.mxu0 %v1379_v6  ;;  %1357 = vmatprep.subr.bf16.mxu1 %v1379_v6 }
  0x24   :  { %1265 = vmatpush3.bf16.msra.mxu0 %v1379_v6  ;;  %1365 = vmatpush3.bf16.msra.mxu1 %v1379_v6 }
  0x25   :  { %1266 = vmatprep.subr.bf16.mxu0 %v1380_v7  ;;  %1358 = vmatprep.subr.bf16.mxu1 %v1380_v7 }
  0x28   :  { %1267 = vmatpush3.bf16.msra.mxu0 %v1380_v7  ;;  %1366 = vmatpush3.bf16.msra.mxu1 %v1380_v7 }
  0x29   :  { %1268 = vmatprep.subr.bf16.mxu0 %v1381_v8  ;;  %1359 = vmatprep.subr.bf16.mxu1 %v1381_v8 }
  0x2c   :  { %1269 = vmatpush3.bf16.msra.mxu0 %v1381_v8  ;;  %1367 = vmatpush3.bf16.msra.mxu1 %v1381_v8 }
  0x2d   :  { %1334 = vmatprep.subr.mxu1 %v1461_v41 }
  0x2f   :  { %1271 = vmatmul.mubr.bf16.vlgmr.msra.gmra.mxu0 %v1383_v10  ;;  %1307 = vmatmul.mubr.bf16.vlgmr.msra.gmra.mxu1 %v1401_v12 }
  0x30   :  { %1274 = vmatprep.mubr.bf16.mxu0 %v1384_v11  ;;  %1310 = vmatprep.mubr.bf16.mxu1 %v1402_v13 }
  0x31   :  { %1335 = vmatpush3.msra.mxu1 %v873_v40 }
  0x32   :  { %1336 = vmatprep.subr.mxu1 %v1461_v41 }
  0x33   :  { %1337 = vmatpush3.msra.mxu1 %v872_v42 }
  0x34   :  { %1338 = vmatprep.subr.mxu1 %v1461_v41 }
  0x37   :  { %1275 = vmatmul.mubr.bf16.gmra.mxu0 %v1385_v14  ;;  %1311 = vmatmul.mubr.bf16.gmra.mxu1 %v1403_v16  ;;  %v871_v16 = vld [vmem:[%s1785_s3 + $0x8] sm:$0xff] }
  0x38   :  { %1278 = vmatprep.mubr.bf16.mxu0 %v1386_v15  ;;  %1314 = vmatprep.mubr.bf16.mxu1 %v1404_v17  ;;  %v870_v17 = vld [vmem:[%s1785_s3] sm:$0xff] }
  0x39   :  { %1339 = vmatpush3.msra.mxu1 %v871_v16 }
  0x3a   :  { %1340 = vmatprep.subr.mxu1 %v1461_v41 }
  0x3b   :  { %1341 = vmatpush3.msra.mxu1 %v870_v17 }
  0x3c   :  { %1345 = vmatprep.subr.mxu1 %v1461_v41 }
  0x3f   :  { %1279 = vmatmul.mubr.bf16.gmra.mxu0 %v1387_v18  ;;  %1315 = vmatmul.mubr.bf16.gmra.mxu1 %v1405_v19 }
  0x40   :  { %1282 = vmatprep.mubr.bf16.mxu0 %v1388_v20  ;;  %1318 = vmatprep.mubr.bf16.mxu1 %v1406_v21 }
  0x47   :  { %1283 = vmatmul.mubr.bf16.gmra.mxu0 %v1389_v22  ;;  %1319 = vmatmul.mubr.bf16.gmra.mxu1 %v1407_v23 }
  0x48   :  { %1286 = vmatprep.mubr.bf16.mxu0 %v1390_v24  ;;  %1322 = vmatprep.mubr.bf16.mxu1 %v1408_v25 }
  0x4f   :  { %1287 = vmatmul.mubr.bf16.gmra.mxu0 %v1391_v26  ;;  %1323 = vmatmul.mubr.bf16.gmra.mxu1 %v1409_v27 }
  0x50   :  { %1290 = vmatprep.mubr.bf16.mxu0 %v1392_v28  ;;  %1326 = vmatprep.mubr.bf16.mxu1 %v1410_v29 }
  0x57   :  { %1291 = vmatmul.mubr.bf16.gmra.mxu0 %v1393_v30  ;;  %1327 = vmatmul.mubr.bf16.gmra.mxu1 %v1411_v31 }
  0x58   :  { %1294 = vmatprep.mubr.bf16.mxu0 %v1394_v32  ;;  %1330 = vmatprep.mubr.bf16.mxu1 %v1412_v33 }
  0x5f   :  { %1295 = vmatmul.mubr.bf16.gmra.mxu0 %v1395_v34  ;;  %1331 = vmatmul.mubr.bf16.gmra.mxu1 %v1413_v35 }
  0x60   :  { %1298 = vmatprep.mubr.bf16.mxu0 %v1396_v36  ;;  %1342 = vmatprep.mubr.msk.f32.mxu1 %vm1462_vm1, %v1461_v41 }
  0x67   :  { %1299 = vmatmul.mubr.bf16.gmra.mxu0 %v1397_v37 }
  0x68   :  { %1302 = vmatprep.mubr.bf16.mxu0 %v1398_v38 }
  0x6f   :  { %1303 = vmatmul.mubr.bf16.gmra.mxu0 %v1399_v39 }
  0xef   :  { %v1272_v43 = vpop.f32.mrf.mxu0  ;;  %v1562_v63 = vpop.f32.mrf.mxu1 }
  0xf0   :  { %v418_v48 = vadd.f32 %v1272_v43, %v1553_v44 }
  0xf1   :  { %v409_v45 = vpop.f32.mrf.mxu0  ;;  %v1569_v10 = vpop.f32.mrf.mxu1 }
  0xf2   :  { %v410_v46 = vadd.f32 %v1553_v44, %v409_v45  ;;  %v666_v54 = vmax.f32 %v418_v48, 0.0 }
  0xf3   :  { %v1273_v47 = vpop.f32.mrf.mxu0  ;;  %v1582_v23 = vpop.f32.mrf.mxu1 }
  0xf4   :  { %v664_v50 = vmax.f32 %v410_v46, 0.0  ;;  %v421_v51 = vadd.f32 %v1273_v47, %v1553_v44  ;;  %v732_v0 = vsel %vm728_vm0, %v666_v54, 0.0 }
  0xf5   :  { %v412_v49 = vpop.f32.mrf.mxu0  ;;  %v1591_v34 = vpop.f32.mrf.mxu1 }
  0xf6   :  { %v413_v52 = vadd.f32 %v1553_v44, %v412_v49  ;;  %v729_v57 = vsel %vm728_vm0, %v664_v50, 0.0  ;;  %v667_v58 = vmax.f32 %v421_v51, 0.0 }
  0xf7   :  { %v1276_v53 = vpop.f32.mrf.mxu0  ;;  %v1596_v47 = vpop.f32.mrf.mxu1 }
  0xf8   :  { %v665_v55 = vmax.f32 %v413_v52, 0.0  ;;  %v434_v1 = vadd.f32 %v1276_v53, %v1553_v44  ;;  %v734_v5 = vsel %vm728_vm0, %v667_v58, 0.0 }
  0xf9   :  { %v425_v56 = vpop.f32.mrf.mxu0  ;;  %v1603_v58 = vpop.f32.mrf.mxu1 }
  0xfa   :  { %v730_v59 = vsel %vm728_vm0, %v665_v55, 0.0  ;;  %v426_v60 = vadd.f32 %v1553_v44, %v425_v56  ;;  %v670_v11 = vmax.f32 %v434_v1, 0.0 }
  0xfb   :  { %v731_v61 = vadd.f32 %v730_v59, %v729_v57  ;;  %v1277_v62 = vpop.f32.mrf.mxu0 }
  0xfc   :  { %v668_v2 = vmax.f32 %v426_v60, 0.0  ;;  %v437_v6 = vadd.f32 %v1277_v62, %v1553_v44  ;;  %v740_v24 = vsel %vm728_vm0, %v670_v11, 0.0 }
  0xfd   :  { %v733_v3 = vadd.f32 %v732_v0, %v731_v61  ;;  %v428_v4 = vpop.f32.mrf.mxu0 }
  0xfe   :  { %v429_v7 = vadd.f32 %v1553_v44, %v428_v4  ;;  %v736_v12 = vsel %vm728_vm0, %v668_v2, 0.0  ;;  %v671_v18 = vmax.f32 %v437_v6, 0.0  ;;  %v1608_v6 = vpop.f32.mrf.mxu1 }
  0xff   :  { %v735_v8 = vadd.f32 %v734_v5, %v733_v3  ;;  %v1280_v9 = vpop.f32.mrf.mxu0 }
 0x100   :  { %v669_v13 = vmax.f32 %v429_v7, 0.0  ;;  %v450_v25 = vadd.f32 %v1280_v9, %v1553_v44  ;;  %v742_v29 = vsel %vm728_vm0, %v671_v18, 0.0  ;;  %v1615_v18 = vpop.f32.mrf.mxu1 }
 0x101   :  { %v737_v14 = vadd.f32 %v736_v12, %v735_v8  ;;  %v441_v15 = vpop.f32.mrf.mxu0 }
 0x102   :  { %v738_v19 = vsel %vm728_vm0, %v669_v13, 0.0  ;;  %v442_v20 = vadd.f32 %v1553_v44, %v441_v15  ;;  %v674_v35 = vmax.f32 %v450_v25, 0.0 }
 0x103   :  { %v739_v21 = vadd.f32 %v738_v19, %v737_v14  ;;  %v1281_v22 = vpop.f32.mrf.mxu0 }
 0x104   :  { %v672_v26 = vmax.f32 %v442_v20, 0.0  ;;  %v453_v30 = vadd.f32 %v1281_v22, %v1553_v44  ;;  %v748_v48 = vsel %vm728_vm0, %v674_v35, 0.0 }
 0x105   :  { %v741_v27 = vadd.f32 %v740_v24, %v739_v21  ;;  %v444_v28 = vpop.f32.mrf.mxu0 }
 0x106   :  { %v445_v31 = vadd.f32 %v1553_v44, %v444_v28  ;;  %v744_v36 = vsel %vm728_vm0, %v672_v26, 0.0  ;;  %v675_v40 = vmax.f32 %v453_v30, 0.0  ;;  %v1620_v30 = vpop.f32.mrf.mxu1 }
 0x107   :  { %v743_v32 = vadd.f32 %v742_v29, %v741_v27  ;;  %v1284_v33 = vpop.f32.mrf.mxu0 }
 0x108   :  { %v673_v37 = vmax.f32 %v445_v31, 0.0  ;;  %v466_v49 = vadd.f32 %v1284_v33, %v1553_v44  ;;  %v750_v53 = vsel %vm728_vm0, %v675_v40, 0.0 }
 0x109   :  { %v745_v38 = vadd.f32 %v744_v36, %v743_v32  ;;  %v457_v39 = vpop.f32.mrf.mxu0 }
 0x10a   :  { %v746_v42 = vsel %vm728_vm0, %v673_v37, 0.0  ;;  %v458_v43 = vadd.f32 %v1553_v44, %v457_v39  ;;  %v678_v59 = vmax.f32 %v466_v49, 0.0 }
 0x10b   :  { %v747_v45 = vadd.f32 %v746_v42, %v745_v38  ;;  %v1285_v46 = vpop.f32.mrf.mxu0 }
 0x10c   :  { %v676_v50 = vmax.f32 %v458_v43, 0.0  ;;  %v469_v54 = vadd.f32 %v1285_v46, %v1553_v44  ;;  %v756_v7 = vsel %vm728_vm0, %v678_v59, 0.0  ;;  %v1627_v43 = vpop.f32.mrf.mxu1 }
 0x10d   :  { %v749_v51 = vadd.f32 %v748_v48, %v747_v45  ;;  %v460_v52 = vpop.f32.mrf.mxu0 }
 0x10e   :  { %v461_v55 = vadd.f32 %v1553_v44, %v460_v52  ;;  %v752_v60 = vsel %vm728_vm0, %v676_v50, 0.0  ;;  %v679_v1 = vmax.f32 %v469_v54, 0.0 }
 0x10f   :  { %v751_v56 = vadd.f32 %v750_v53, %v749_v51  ;;  %v1288_v57 = vpop.f32.mrf.mxu0 }
 0x110   :  { %v677_v61 = vmax.f32 %v461_v55, 0.0  ;;  %v482_v8 = vadd.f32 %v1288_v57, %v1553_v44  ;;  %v758_v13 = vsel %vm728_vm0, %v679_v1, 0.0 }
 0x111   :  { %v753_v62 = vadd.f32 %v752_v60, %v751_v56  ;;  %v473_v0 = vpop.f32.mrf.mxu0  ;;  %v1632_v56 = vpop.f32.mrf.mxu1 }
 0x112   :  { %v754_v2 = vsel %vm728_vm0, %v677_v61, 0.0  ;;  %v474_v3 = vadd.f32 %v1553_v44, %v473_v0  ;;  %v682_v19 = vmax.f32 %v482_v8, 0.0 }
 0x113   :  { %v755_v4 = vadd.f32 %v754_v2, %v753_v62  ;;  %v1289_v5 = vpop.f32.mrf.mxu0 }
 0x114   :  { %v680_v9 = vmax.f32 %v474_v3, 0.0  ;;  %v485_v14 = vadd.f32 %v1289_v5, %v1553_v44  ;;  %v764_v31 = vsel %vm728_vm0, %v682_v19, 0.0  ;;  %v1639_v5 = vpop.f32.mrf.mxu1 }
 0x115   :  { %v757_v11 = vadd.f32 %v756_v7, %v755_v4  ;;  %v476_v12 = vpop.f32.mrf.mxu0 }
 0x116   :  { %v477_v15 = vadd.f32 %v1553_v44, %v476_v12  ;;  %v760_v20 = vsel %vm728_vm0, %v680_v9, 0.0  ;;  %v683_v25 = vmax.f32 %v485_v14, 0.0  ;;  %v1644_v19 = vpop.f32.mrf.mxu1 }
 0x117   :  { %v759_v16 = vadd.f32 %v758_v13, %v757_v11  ;;  %v1292_v17 = vpop.f32.mrf.mxu0 }
 0x118   :  { %v681_v21 = vmax.f32 %v477_v15, 0.0  ;;  %v498_v32 = vadd.f32 %v1292_v17, %v1553_v44  ;;  %v766_v37 = vsel %vm728_vm0, %v683_v25, 0.0 }
 0x119   :  { %v761_v22 = vadd.f32 %v760_v20, %v759_v16  ;;  %v489_v24 = vpop.f32.mrf.mxu0 }
 0x11a   :  { %v762_v26 = vsel %vm728_vm0, %v681_v21, 0.0  ;;  %v490_v27 = vadd.f32 %v1553_v44, %v489_v24  ;;  %v686_v45 = vmax.f32 %v498_v32, 0.0  ;;  %v1651_v32 = vpop.f32.mrf.mxu1 }
 0x11b   :  { %v763_v28 = vadd.f32 %v762_v26, %v761_v22  ;;  %v1293_v29 = vpop.f32.mrf.mxu0 }
 0x11c   :  { %v684_v33 = vmax.f32 %v490_v27, 0.0  ;;  %v501_v38 = vadd.f32 %v1293_v29, %v1553_v44  ;;  %v772_v57 = vsel %vm728_vm0, %v686_v45, 0.0 }
 0x11d   :  { %v765_v35 = vadd.f32 %v764_v31, %v763_v28  ;;  %v492_v36 = vpop.f32.mrf.mxu0 }
 0x11e   :  { %v493_v39 = vadd.f32 %v1553_v44, %v492_v36  ;;  %v768_v46 = vsel %vm728_vm0, %v684_v33, 0.0  ;;  %v687_v51 = vmax.f32 %v501_v38, 0.0 }
 0x11f   :  { %v767_v40 = vadd.f32 %v766_v37, %v765_v35  ;;  %v1296_v42 = vpop.f32.mrf.mxu0 }
 0x120   :  { %v685_v48 = vmax.f32 %v493_v39, 0.0  ;;  %v514_v59 = vadd.f32 %v1296_v42, %v1553_v44  ;;  %v774_v0 = vsel %vm728_vm0, %v687_v51, 0.0 }
 0x121   :  { %v769_v49 = vadd.f32 %v768_v46, %v767_v40  ;;  %v505_v50 = vpop.f32.mrf.mxu0 }
 0x122   :  { %v770_v52 = vsel %vm728_vm0, %v685_v48, 0.0  ;;  %v506_v53 = vadd.f32 %v1553_v44, %v505_v50  ;;  %v690_v7 = vmax.f32 %v514_v59, 0.0  ;;  %v1656_v48 = vpop.f32.mrf.mxu1 }
 0x123   :  { %v771_v54 = vadd.f32 %v770_v52, %v769_v49  ;;  %v1297_v55 = vpop.f32.mrf.mxu0 }
 0x124   :  { %v688_v60 = vmax.f32 %v506_v53, 0.0  ;;  %v517_v1 = vadd.f32 %v1297_v55, %v1553_v44  ;;  %v780_v20 = vsel %vm728_vm0, %v690_v7, 0.0 }
 0x125   :  { %v773_v61 = vadd.f32 %v772_v57, %v771_v54  ;;  %v508_v62 = vpop.f32.mrf.mxu0 }
 0x126   :  { %v509_v2 = vadd.f32 %v1553_v44, %v508_v62  ;;  %v776_v8 = vsel %vm728_vm0, %v688_v60, 0.0  ;;  %v691_v13 = vmax.f32 %v517_v1, 0.0  ;;  %v604_v60 = vpop.f32.mrf.mxu1  ;;  %v554_v62 = vadd.f32 %v1553_v44, %v1569_v10 }
 0x127   :  { %v775_v3 = vadd.f32 %v774_v0, %v773_v61  ;;  %v1300_v4 = vpop.f32.mrf.mxu0 }
 0x128   :  { %v689_v9 = vmax.f32 %v509_v2, 0.0  ;;  %v530_v21 = vadd.f32 %v1300_v4, %v1553_v44  ;;  %v782_v26 = vsel %vm728_vm0, %v691_v13, 0.0  ;;  %v557_v4 = vadd.f32 %v1553_v44, %v1591_v34 }
 0x129   :  { %v777_v11 = vadd.f32 %v776_v8, %v775_v3  ;;  %v521_v12 = vpop.f32.mrf.mxu0  ;;  %v1671_v8 = vpop.f32.mrf.mxu1 }
 0x12a   :  { %v778_v14 = vsel %vm728_vm0, %v689_v9, 0.0  ;;  %v522_v15 = vadd.f32 %v1553_v44, %v521_v12  ;;  %v694_v33 = vmax.f32 %v530_v21, 0.0  ;;  %v700_v12 = vmax.f32 %v554_v62, 0.0 }
 0x12b   :  { %v779_v16 = vadd.f32 %v778_v14, %v777_v11  ;;  %v1301_v17 = vpop.f32.mrf.mxu0  ;;  %v562_v11 = vadd.f32 %v1562_v63, %v1553_v44  ;;  %v565_v14 = vadd.f32 %v1582_v23, %v1553_v44  ;;  %v570_v21 = vadd.f32 %v1553_v44, %v1603_v58 }
 0x12c   :  { %v692_v22 = vmax.f32 %v522_v15, 0.0  ;;  %v533_v27 = vadd.f32 %v1301_v17, %v1553_v44  ;;  %v788_v49 = vsel %vm728_vm0, %v694_v33, 0.0  ;;  %v701_v15 = vmax.f32 %v557_v4, 0.0  ;;  %v617_v17 = vpop.f32.mrf.mxu1 }
 0x12d   :  { %v781_v24 = vadd.f32 %v780_v20, %v779_v16  ;;  %v524_v25 = vpop.f32.mrf.mxu0  ;;  %v702_v20 = vmax.f32 %v562_v11, 0.0  ;;  %v805_v34 = vsel %vm728_vm0, %v700_v12, 0.0  ;;  %v581_v58 = vadd.f32 %v1608_v6, %v1553_v44 }
 0x12e   :  { %v525_v28 = vadd.f32 %v1553_v44, %v524_v25  ;;  %v784_v35 = vsel %vm728_vm0, %v692_v22, 0.0  ;;  %v695_v39 = vmax.f32 %v533_v27, 0.0  ;;  %v807_v63 = vsel %vm728_vm0, %v701_v15, 0.0  ;;  %v1325_v27 = vpop.f32.mrf.mxu1 }
 0x12f   :  { %v783_v29 = vadd.f32 %v782_v26, %v781_v24  ;;  %v1304_v31 = vpop.f32.mrf.mxu0  ;;  %v703_v24 = vmax.f32 %v565_v14, 0.0  ;;  %v573_v25 = vadd.f32 %v1553_v44, %v1615_v18  ;;  %v809_v23 = vsel %vm728_vm0, %v702_v20, 0.0 }
 0x130   :  { %v693_v36 = vmax.f32 %v525_v28, 0.0  ;;  %v546_v50 = vadd.f32 %v1304_v31, %v1553_v44  ;;  %v790_v53 = vsel %vm728_vm0, %v695_v39, 0.0  ;;  %v578_v28 = vadd.f32 %v1596_v47, %v1553_v44 }
 0x131   :  { %v785_v37 = vadd.f32 %v784_v35, %v783_v29  ;;  %v537_v38 = vpop.f32.mrf.mxu0  ;;  %v704_v29 = vmax.f32 %v570_v21, 0.0  ;;  %v811_v33 = vsel %vm728_vm0, %v703_v24, 0.0  ;;  %v705_v35 = vmax.f32 %v573_v25, 0.0 }
 0x132   :  { %v786_v40 = vsel %vm728_vm0, %v693_v36, 0.0  ;;  %v538_v42 = vadd.f32 %v1553_v44, %v537_v38  ;;  %v698_v61 = vmax.f32 %v546_v50, 0.0  ;;  %v706_v38 = vmax.f32 %v578_v28, 0.0 }
 0x133   :  { %v787_v45 = vadd.f32 %v786_v40, %v785_v37  ;;  %v1305_v46 = vpop.f32.mrf.mxu0  ;;  %v620_v37 = vpop.f32.mrf.mxu1  ;;  %v813_v18 = vsel %vm728_vm0, %v704_v29, 0.0  ;;  %v586_v39 = vadd.f32 %v1553_v44, %v1627_v43  ;;  %v815_v47 = vsel %vm728_vm0, %v705_v35, 0.0 }
 0x134   :  { %v696_v54 = vmax.f32 %v538_v42, 0.0  ;;  %v549_v55 = vadd.f32 %v1305_v46, %v1553_v44  ;;  %v801_v9 = vsel %vm728_vm0, %v698_v61, 0.0  ;;  %v707_v42 = vmax.f32 %v581_v58, 0.0 }
 0x135   :  { %v789_v51 = vadd.f32 %v788_v49, %v787_v45  ;;  %v540_v52 = vpop.f32.mrf.mxu0  ;;  %v589_v45 = vadd.f32 %v1553_v44, %v1639_v5  ;;  %v1328_v49 = vpop.f32.mrf.mxu1  ;;  %v817_v6 = vsel %vm728_vm0, %v706_v38, 0.0  ;;  %v594_v50 = vadd.f32 %v1620_v30, %v1553_v44 }
 0x136   :  { %v541_v57 = vadd.f32 %v1553_v44, %v540_v52  ;;  %v798_v1 = vsel %vm728_vm0, %v696_v54, 0.0  ;;  %v699_v2 = vmax.f32 %v549_v55, 0.0  ;;  %v597_v43 = vadd.f32 %v1632_v56, %v1553_v44 }
 0x137   :  { %v1663_v59 = vadd.f32 %v790_v53, %v789_v51  ;;  %v708_v51 = vmax.f32 %v586_v39, 0.0  ;;  %v819_v53 = vsel %vm728_vm0, %v707_v42, 0.0  ;;  %v709_v54 = vmax.f32 %v589_v45, 0.0 }
 0x138   :  { %v697_v0 = vmax.f32 %v541_v57, 0.0  ;;  %v803_v10 = vsel %vm728_vm0, %v699_v2, 0.0  ;;  %v633_v57 = vpop.f32.mrf.mxu1  ;;  %v710_v61 = vmax.f32 %v594_v50, 0.0  ;;  %v602_v62 = vadd.f32 %v1553_v44, %v1651_v32 }
 0x139   :  { %v821_v5 = vsel %vm728_vm0, %v708_v51, 0.0  ;;  %v823_v30 = vsel %vm728_vm0, %v709_v54, 0.0  ;;  %v605_v2 = vadd.f32 %v1553_v44, %v604_v60  ;;  %v610_v56 = vadd.f32 %v1644_v19, %v1553_v44 }
 0x13a   :  { %v799_v3 = vsel %vm728_vm0, %v697_v0, 0.0  ;;  %v1329_v4 = vpop.f32.mrf.mxu1  ;;  %v613_v32 = vadd.f32 %v1656_v48, %v1553_v44  ;;  %v621_v19 = vadd.f32 %v1553_v44, %v620_v37  ;;  %v626_v48 = vadd.f32 %v1671_v8, %v1553_v44 }
 0x13b   :  { %v800_v7 = vadd.f32 %v799_v3, %v798_v1  ;;  %v711_v1 = vmax.f32 %v597_v43, 0.0  ;;  %v714_v15 = vmax.f32 %v610_v56, 0.0  ;;  %v629_v28 = vadd.f32 %v1325_v27, %v1553_v44 }
 0x13c   :  { %v636_v14 = vpop.f32.mrf.mxu1  ;;  %v634_v35 = vadd.f32 %v1553_v44, %v633_v57  ;;  %v642_v27 = vadd.f32 %v1328_v49, %v1553_v44 }
 0x13d   :  { %v802_v13 = vadd.f32 %v801_v9, %v800_v7  ;;  %v825_v7 = vsel %vm728_vm0, %v710_v61, 0.0  ;;  %v712_v9 = vmax.f32 %v602_v62, 0.0  ;;  %v827_v12 = vsel %vm728_vm0, %v711_v1, 0.0 }
 0x13e   :  { %v1332_v24 = vpop.f32.mrf.mxu1  ;;  %v719_v37 = vmax.f32 %v629_v28, 0.0  ;;  %v637_v8 = vadd.f32 %v1553_v44, %v636_v14  ;;  %v720_v42 = vmax.f32 %v634_v35, 0.0  ;;  %v792_v1 = vrot.slane %v1663_v59, 4  ;;  %v959_v28 = vld [vmem:[%s1787_s5 + $0x8] sm:$0xff] }
 0x13f   :  { %v804_v16 = vadd.f32 %v803_v10, %v802_v13  ;;  %v713_v13 = vmax.f32 %v605_v2, 0.0  ;;  %v829_v60 = vsel %vm728_vm0, %v712_v9, 0.0  ;;  %v658_v62 = vadd.f32 %v1332_v24, %v1553_v44 }
 0x140   :  { %v843_v45 = vsel %vm728_vm0, %v719_v37, 0.0  ;;  %v1044_v37 = vld [vmem:[%s1789_s7 + $0x10] sm:$0xff] }
 0x141   :  { %v806_v22 = vadd.f32 %v805_v34, %v804_v16  ;;  %v618_v16 = vadd.f32 %v1553_v44, %v617_v17  ;;  %v715_v34 = vmax.f32 %v613_v32, 0.0  ;;  %v831_v21 = vsel %vm728_vm0, %v713_v13, 0.0 }
 0x142   :  { %v717_v17 = vmax.f32 %v621_v19, 0.0  ;;  %v726_v56 = vmax.f32 %v658_v62, 0.0 }
 0x143   :  { %v808_v26 = vadd.f32 %v807_v63, %v806_v22  ;;  %v833_v63 = vsel %vm728_vm0, %v714_v15, 0.0  ;;  %v716_v25 = vmax.f32 %v618_v16, 0.0 }
 0x144   :  { %v839_v38 = vsel %vm728_vm0, %v717_v17, 0.0  ;;  %v857_v14 = vsel %vm728_vm0, %v726_v56, 0.0  ;;  %v958_v17 = vld [vmem:[%s1787_s5] sm:$0xff] }
 0x145   :  { %v810_v31 = vadd.f32 %v809_v23, %v808_v26  ;;  %v835_v23 = vsel %vm728_vm0, %v715_v34, 0.0  ;;  %v837_v58 = vsel %vm728_vm0, %v716_v25, 0.0 }
 0x147   :  { %v812_v36 = vadd.f32 %v811_v33, %v810_v31  ;;  %v649_v31 = vpop.f32.mrf.mxu1  ;;  %v718_v33 = vmax.f32 %v626_v48, 0.0 }
 0x148   :  { %v650_v43 = vadd.f32 %v1553_v44, %v649_v31 }
 0x149   :  { %v814_v40 = vadd.f32 %v813_v18, %v812_v36  ;;  %v1333_v39 = vpop.f32.mrf.mxu1 }
 0x14b   :  { %v816_v46 = vadd.f32 %v815_v47, %v814_v40  ;;  %v841_v40 = vsel %vm728_vm0, %v718_v33, 0.0  ;;  %v652_v51 = vpop.f32.mrf.mxu1 }
 0x14c   :  { %v653_v49 = vadd.f32 %v1553_v44, %v652_v51 }
 0x14d   :  { %v818_v52 = vadd.f32 %v817_v6, %v816_v46  ;;  %v645_v46 = vadd.f32 %v1329_v4, %v1553_v44  ;;  %v721_v6 = vmax.f32 %v637_v8, 0.0  ;;  %v1042_v8 = vld [vmem:[%s1789_s7] sm:$0xff] }
 0x14e   :  { %v725_v4 = vmax.f32 %v653_v49, 0.0 }
 0x14f   :  { %v820_v55 = vadd.f32 %v819_v53, %v818_v52  ;;  %v722_v52 = vmax.f32 %v642_v27, 0.0  ;;  %v845_v53 = vsel %vm728_vm0, %v720_v42, 0.0  ;;  %v847_v57 = vsel %vm728_vm0, %v721_v6, 0.0  ;;  %v1046_v6 = vld [vmem:[%s1790_s8] sm:$0x3] }
 0x150   :  { %v855_v13 = vsel %vm728_vm0, %v725_v4, 0.0  ;;  %v1048_v42 = vlaneseq }
 0x151   :  { %v822_v0 = vadd.f32 %v821_v5, %v820_v55  ;;  %v723_v55 = vmax.f32 %v645_v46, 0.0  ;;  %v849_v5 = vsel %vm728_vm0, %v722_v52, 0.0 }
 0x153   :  { %v824_v3 = vadd.f32 %v823_v30, %v822_v0  ;;  %v724_v0 = vmax.f32 %v650_v43, 0.0  ;;  %v851_v2 = vsel %vm728_vm0, %v723_v55, 0.0 }
 0x155   :  { %v826_v11 = vadd.f32 %v825_v7, %v824_v3  ;;  %v661_v3 = vadd.f32 %v1333_v39, %v1553_v44  ;;  %v853_v9 = vsel %vm728_vm0, %v724_v0, 0.0 }
 0x157   :  { %v828_v10 = vadd.f32 %v827_v12, %v826_v11  ;;  %v793_v11 = vadd.f32 %v792_v1, %v1663_v59  ;;  %v727_v32 = vmax.f32 %v661_v3, 0.0 }
 0x159   :  { %v830_v20 = vadd.f32 %v829_v60, %v828_v10  ;;  %v794_v15 = vrot.slane %v793_v11, 2  ;;  %v859_v16 = vsel %vm728_vm0, %v727_v32, 0.0 }
 0x15b   :  { %v832_v22 = vadd.f32 %v831_v21, %v830_v20  ;;  %v795_v44 = vadd.f32 %v794_v15, %v793_v11 }
 0x15d   :  { %v834_v26 = vadd.f32 %v833_v63, %v832_v22  ;;  %v796_v19 = vrot.slane %v795_v44, 1 }
 0x15f   :  { %v836_v29 = vadd.f32 %v835_v23, %v834_v26  ;;  %v797_v59 = vadd.f32 %v796_v19, %v795_v44 }
 0x161   :  { %v838_v36 = vadd.f32 %v837_v58, %v836_v29  ;;  %v868_v25 = vmul.f32 0.00390625, %v797_v59  ;;  %v1200_v29 = vld [vmem:[%s1786_s4] ss:$0 sm:$0xff] }
 0x163   :  { %v840_v18 = vadd.f32 %v839_v38, %v838_v36  ;;  %v1045_v36 = vld [vmem:[%s1789_s7 + $0x18] sm:$0xff]  ;;  %v1043_v38 = vld [vmem:[%s1789_s7 + $0x8] sm:$0xff]  ;;  %s1463_s7 = smov [#allocation5]  }
 0x165   :  { %v842_v47 = vadd.f32 %v841_v40, %v840_v18 }
 0x167   :  { %v844_v50 = vadd.f32 %v843_v45, %v842_v47  ;;  %v1049_v47 = vshrl.u32 %v1048_v42, 7 }
 0x169   :  { %v846_v54 = vadd.f32 %v845_v53, %v844_v50  ;;  %v1050_v45 = vsub.s32 0, %v1049_v47  ;;  %v1054_v46 = vsub.s32 1, %v1049_v47 }
 0x16b   :  { %v848_v61 = vadd.f32 %v847_v57, %v846_v54  ;;  %v1051_v50 = vrot.slane %v1046_v6, %v1050_v45  ;;  %v1055_v51 = vrot.slane %v1046_v6, %v1054_v46 }
 0x16d   :  { %v850_v30 = vadd.f32 %v849_v5, %v848_v61 }
 0x16f   :  { %v852_v7 = vadd.f32 %v851_v2, %v850_v30 }
 0x171   :  { %v854_v12 = vadd.f32 %v853_v9, %v852_v7 }
 0x173   :  { %v856_v10 = vadd.f32 %v855_v13, %v854_v12 }
 0x175   :  { %v858_v60 = vadd.f32 %v857_v14, %v856_v10 }
 0x177   :  { %v860_v20 = vadd.f32 %v859_v16, %v858_v60 }
 0x179   :  { %v861_v34 = vrot.slane %v860_v20, 4 }
 0x17b   :  { %v862_v21 = vadd.f32 %v861_v34, %v860_v20 }
 0x17d   :  { %v863_v22 = vrot.slane %v862_v21, 2 }
 0x17f   :  { %v864_v24 = vadd.f32 %v863_v22, %v862_v21 }
 0x181   :  { %v865_v63 = vrot.slane %v864_v24, 1 }
 0x183   :  { %v866_v48 = vadd.f32 %v865_v63, %v864_v24 }
 0x185   :  { %v869_v26 = vmul.f32 0.00390625, %v866_v48 }
 0x187   :  { %v884_v23 = vsel %vm883_vm2, %v869_v26, %v868_v25 }
 0x188   :  { %1343 = vmatmul.mubr.msk.f32.vlgmr.msra.gmra.mxu1 %vm728_vm0, %v884_v23 }
 0x189   :  { %1349 = vmatprep.mubr.msk.f32.mxu1 %vm1462_vm1, %v1461_v41  ;;  %1346 = vmatpush3.msra.mxu1 %v959_v28 }
 0x18a   :  { %1347 = vmatprep.subr.mxu1 %v1461_v41 }
 0x18b   :  { %1348 = vmatpush3.msra.mxu1 %v958_v17 }
 0x18c   :  { %1089 = vmatprep.subr.mxu1 %v1045_v36 }
 0x248   :  { %v953_v31 = vpop.f32.mrf.mxu1 }
 0x249   :  { %v954_v33 = vadd.f32 %v1200_v29, %v953_v31 }
 0x24a   :  { %v1344_v58 = vpop.f32.mrf.mxu1 }
 0x24b   :  { %v957_v35 = vmax.f32 %v954_v33, 0.0 }
 0x24d   :  { %1350 = vmatmul.mubr.msk.f32.vlgmr.msra.gmra.mxu1 %vm967_vm3, %v957_v35 }
 0x24e   :  { %1125 = vmatprep.mubr.f32.mxu1 %v1461_v41  ;;  %1090 = vmatpush1.msra.mxu1 %v1044_v37  ;;  %v1202_v41 = vld [vmem:[%s1788_s6] ss:$0 sm:$0xff]  ;;  %s1150_s6 = sshll.u32 %s1463_s7, 4  ;;  %s1151_s6 = int_to_ptr.vmem [resolvable:$true] %s1150_s6 }
 0x24f   :  { %1091 = vmatprep.subr.mxu1 %v1043_v38  ;;  %s1434_s10 = scalar_lea.vmem %s1151_s6, 64  ;;  %p1439_p6 = scmp.lt.s32.totalorder %s1151_s6, %s1151_s6 }
 0x250   :  { %1092 = vmatpush1.msra.mxu1 %v1042_v8  ;;  %p1435_p5 = scmp.ne.s32.totalorder %s1151_s6, %s1434_s10  ;;  %p1440_p7 = scmp.lt.s32.totalorder %s1434_s10, %s1434_s10 }
 0x252   :  { %p1441_p8 = por %p1440_p7, %p1439_p6 }
 0x254   :  { %p1442_p9 = pnand %p1441_p8, %p1435_p5 }
 0x30d   :  { %v1037_v18 = vpop.f32.mrf.mxu1 }
 0x30e   :  { %v1038_v39 = vadd.f32 %v1202_v41, %v1037_v18 }
 0x30f   :  { %v1351_v40 = vpop.f32.mrf.mxu1 }
 0x310   :  { %v1041_v27 = vmax.f32 %v1038_v39, 0.0 }
 0x312   :  { %1204 = vmatmul.mubr.msk.f32.vlgmr.msra.gmra.mxu1 %vm967_vm3, %v1041_v27 }
 0x3d2   :  { %v1127_v52 = vpop.f32.mrf.mxu1 }
 0x3d3   :  { %v1128_v43 = vadd.f32 %v1127_v52, %v1051_v50 }
 0x3d4   :  { %v1129_v53 = vpop.f32.mrf.mxu1 }
 0x3d5   :  { %v1130_v54 = vadd.f32 %v1129_v53, %v1055_v51 }
 0x3d7   :  { %v1134_v55 = vcombine.low %v1128_v43, %v1130_v54 }
 0x3d9   :  { %1205 = vst.sshfl [vmem:[#allocation5] sm:$0x33 pattern:$0x76325410] %v1134_v55 }
 0x3da   :  { %1445 = shalt.err (!%p1442_p9)
}
 0x3db   :  { %1153 = dma.vmem_to_hbm [thread:$0]  %s1151_s6, 64, %s1791_s9, [#allocation4]  }
 0x3dc   :  { %1456 = dma.done.wait [#allocation4], 64  }
 0x3dd   :  { %1457 = vsyncadd [#allocation4], 4294967232 }
 0x3de   :  { %1157 = vsyncpa [#allocation3], 1 }
 0x3df   :  { %1158 = vsyncpa [#allocation4], 1 }

</bundles_post_ra>
